<compile_context>
chip_gen: v6e
topology: v6e:2x2x1
jax: 0.10.0
libtpu: 0.0.40
codegen_flags: <defaults>
</compile_context>

<pallas_src>
import jax
import jax.numpy as jnp
from jax.experimental import pallas as pl
from jax.experimental.pallas import tpu as pltpu


def _round_up(n, m):
    return ((n + m - 1) // m) * m


def comparenet_kernel(x_ref, w_ref, b_ref, o_ref):
    # Fused Linear(20 -> 2) + bias + ReLU for one batch tile.
    # x_ref: [tb, in_f] VMEM; w_ref: [in_f, out_f] VMEM (transposed once in the
    # wrapper); b_ref: [1, out_f] VMEM; o_ref: [tb, out_f] VMEM.
    x = x_ref[...]
    w = w_ref[...]
    y = jnp.dot(x, w, preferred_element_type=jnp.float32)   # MXU GEMV
    y = y + b_ref[...]                                       # broadcast (1, out_f)
    o_ref[...] = jnp.maximum(y, 0.0).astype(o_ref.dtype)     # one full-tile store


def comparenet_forward(x, w, b, *, tile_b=8192):
    """relu(x @ w.T + b).  x: [B, 20] f32, w: [2, 20] (torch layout), b: [2] f32."""
    B, in_f = x.shape
    out_f = w.shape[0]

    w_t = jnp.transpose(w)            # [in_f, out_f]; tiny (20x2), done once
    b2 = jnp.reshape(b, (1, out_f))   # broadcastable bias row

    # Pad the batch to a multiple of 8 only (<= 7 rows) -- no full-array copy
    # of x for the common B % tile != 0 case; the ragged last block is masked.
    b8 = _round_up(B, 8)
    if b8 != B:
        x = jnp.pad(x, ((0, b8 - B), (0, 0)))

    # Tile: multiple of 8, capped at tile_b, and clamped so a large batch gives
    # at least 2 grid steps (v7x megacore sharding via "parallel").
    tb = min(int(tile_b), max(8, _round_up(pl.cdiv(b8, 2), 8)))
    grid = (pl.cdiv(b8, tb),)

    cost = pl.CostEstimate(
        flops=2 * B * in_f * out_f,
        transcendentals=0,
        bytes_accessed=4 * (B * in_f + B * out_f + in_f * out_f + out_f),
    )

    out = pl.pallas_call(
        comparenet_kernel,
        out_shape=jax.ShapeDtypeStruct((b8, out_f), jnp.float32),
        grid_spec=pltpu.PrefetchScalarGridSpec(
            num_scalar_prefetch=0,
            grid=grid,
            in_specs=[
                # x: batch-tiled; last dim (20) equals the full array dim.
                pl.BlockSpec((tb, in_f), lambda i: (i, 0)),
                # weight: grid-invariant full-array block (fetched once).
                pl.BlockSpec((in_f, out_f), lambda i: (0, 0)),
                # bias: grid-invariant (1, out_f) block.
                pl.BlockSpec((1, out_f), lambda i: (0, 0)),
            ],
            out_specs=pl.BlockSpec((tb, out_f), lambda i: (i, 0)),
        ),
        compiler_params=pltpu.CompilerParams(
            dimension_semantics=("parallel",),       # rows independent
            vmem_limit_bytes=48 * 1024 * 1024,       # safe on v7x (64 MiB physical)
        ),
        cost_estimate=cost,
    )(x, w_t, b2)
    return out[:B]


# TODO(synk): BatchNorm1d and Dropout branches are disabled by default in the
# PyTorch module (dropout=False, batch_normalization=False) and are not applied.


if __name__ == "__main__":
    key = jax.random.PRNGKey(0)
    kx, kw, kb, kx2 = jax.random.split(key, 4)

    IN_F, OUT_F = 20, 2

    # Deterministic params mirroring nn.Linear(20, 2): weight [out_f, in_f],
    # bias [out_f] (torch layout kept; wrapper handles the transpose).
    bound = 1.0 / (IN_F ** 0.5)
    w = jax.random.uniform(kw, (OUT_F, IN_F), jnp.float32, -bound, bound)
    b = jax.random.uniform(kb, (OUT_F,), jnp.float32, -bound, bound)

    def ref_fn(xx):
        return jnp.maximum(xx @ w.T + b[None, :], 0.0)

    # Small demo batch (single grid step, no padding).
    x = jax.random.normal(kx, (8, IN_F), dtype=jnp.float32)
    out = comparenet_forward(x, w, b)
    jax.block_until_ready(out)
    assert out.shape == (8, OUT_F)
    assert jnp.allclose(out, ref_fn(x), atol=1e-5), "mismatch vs reference (B=8)"

    # Batch exercising the ragged last block: B=20 -> padded to 24 rows,
    # tb=16, grid=2 with a masked overhang on the final block.
    x2 = jax.random.normal(kx2, (20, IN_F), dtype=jnp.float32)
    out2 = comparenet_forward(x2, w, b)
    jax.block_until_ready(out2)
    assert out2.shape == (20, OUT_F)
    assert jnp.allclose(out2, ref_fn(x2), atol=1e-5), "mismatch vs reference (B=20)"

    print("KERNEL_OK")
</pallas_src>

<mosaic_0001>
module attributes {stable_mosaic.version = 11 : i64} {
  func.func @comparenet_kernel(%arg0: i32, %arg1: memref<8x20xf32, #tpu.memory_space<vmem>>, %arg2: memref<20x2xf32, #tpu.memory_space<vmem>>, %arg3: memref<1x2xf32, #tpu.memory_space<vmem>>, %arg4: memref<8x2xf32, #tpu.memory_space<vmem>>) attributes {dimension_semantics = [#tpu.dimension_semantics<parallel>], iteration_bounds = array<i64: 1>, scalar_prefetch = 0 : i64, scratch_operands = 0 : i64, tpu.core_type = #tpu.core_type<tc>, window_params = [{transform_indices = @transform_0, window_bounds = array<i64: 8, 20>}, {pipeline_mode = #tpu.pipeline_mode<synchronous>, transform_indices = @transform_1, window_bounds = array<i64: 20, 2>}, {pipeline_mode = #tpu.pipeline_mode<synchronous>, transform_indices = @transform_2, window_bounds = array<i64: 1, 2>}, {transform_indices = @transform_3, window_bounds = array<i64: 8, 2>}]} {
    %c0 = arith.constant 0 : index
    %c0_0 = arith.constant 0 : index
    %0 = vector.load %arg1[%c0, %c0_0] : memref<8x20xf32, #tpu.memory_space<vmem>>, vector<8x20xf32>
    %c0_1 = arith.constant 0 : index
    %c0_2 = arith.constant 0 : index
    %1 = vector.load %arg2[%c0_1, %c0_2] : memref<20x2xf32, #tpu.memory_space<vmem>>, vector<20x2xf32>
    %cst = arith.constant dense<0.000000e+00> : vector<8x2xf32>
    %2 = tpu.matmul %0, %1, %cst {dimension_numbers = #tpu.dot_dimension_numbers<[1], [0], [0], [1], [0, 0, 1, 1], [], []>} : vector<8x20xf32>, vector<20x2xf32>, vector<8x2xf32> -> vector<8x2xf32>
    %c0_3 = arith.constant 0 : index
    %c0_4 = arith.constant 0 : index
    %3 = vector.load %arg3[%c0_3, %c0_4] : memref<1x2xf32, #tpu.memory_space<vmem>>, vector<1x2xf32>
    %4 = vector.broadcast %3 : vector<1x2xf32> to vector<8x2xf32>
    %5 = arith.addf %2, %4 : vector<8x2xf32>
    %cst_5 = arith.constant 0.000000e+00 : f32
    %6 = vector.broadcast %cst_5 : f32 to vector<8x2xf32>
    %7 = arith.maximumf %5, %6 : vector<8x2xf32>
    %c0_6 = arith.constant 0 : index
    %c0_7 = arith.constant 0 : index
    %8 = vector.load %arg4[%c0_6, %c0_7] : memref<8x2xf32, #tpu.memory_space<vmem>>, vector<8x2xf32>
    tpu.vector_store %arg4[%c0_6, %c0_7], %7 {strides = array<i32>} : memref<8x2xf32, #tpu.memory_space<vmem>>, vector<8x2xf32>,
    return
  }
  func.func @transform_0(%arg0: i32) -> (i32, i32) {
    %c0_i32 = arith.constant 0 : i32
    %c0_i32_0 = arith.constant 0 : i32
    return %arg0, %c0_i32 : i32, i32
  }
  func.func @transform_1(%arg0: i32) -> (i32, i32) {
    %c0_i32 = arith.constant 0 : i32
    %c0_i32_0 = arith.constant 0 : i32
    %c0_i32_1 = arith.constant 0 : i32
    return %c0_i32, %c0_i32_0 : i32, i32
  }
  func.func @transform_2(%arg0: i32) -> (i32, i32) {
    %c0_i32 = arith.constant 0 : i32
    %c0_i32_0 = arith.constant 0 : i32
    %c0_i32_1 = arith.constant 0 : i32
    return %c0_i32, %c0_i32_0 : i32, i32
  }
  func.func @transform_3(%arg0: i32) -> (i32, i32) {
    %c0_i32 = arith.constant 0 : i32
    %c0_i32_0 = arith.constant 0 : i32
    return %arg0, %c0_i32 : i32, i32
  }
}

</mosaic_0001>

<bundles_post_ra>
// kernel: tpu_custom_call.1
= control target key start
LH: loop header
LB: loop body
LE: loop exit
PB: predicated region body
PF: predicated region fallthrough
CT: control target
= control target key end

     0   :  { %vm29_vm0 = vcmask 1043456   ;;  %v128_v0 = vmov 0.0   ;;  %vm129_vm1 = vmmov 0   ;;  %vm25_vm2 = vcmask 162816   ;;  %s168_s1 = inlined_call_operand.vmem [shape: f32[20,2], index: 1, kind: input, shape index: {}]   ;;  %s169_s0 = inlined_call_operand.vmem [shape: f32[8,20], index: 0, kind: input, shape index: {}]   ;;  %s170_s2 = inlined_call_operand.vmem [shape: f32[1,2], index: 2, kind: input, shape index: {}]   ;;  %s171_s3 = inlined_call_operand.vmem [shape: f32[8,2], index: 3, kind: output, shape index: {}]  }
   0x1   :  { %117 = vmatprep.subr.mxu0 %v128_v0  ;;  %v17_v1 = vld [vmem:[%s168_s1 + $0x10] sm:$0xf]  ;;  %v16_v2 = vld [vmem:[%s168_s1 + $0x8] sm:$0xff]  ;;  %123 = vmatprep.mubr.msk.f32.mxu0 %vm129_vm1, %v128_v0  ;;  %v15_v3 = vld [vmem:[%s168_s1] sm:$0xff]  ;;  %vm104_vm3 = vcmask 15360  }
   0x2   :  { %118 = vmatpush3.msk.msra.mxu0 %vm29_vm0, %v17_v1  ;;  %v14_v4 = vld [vmem:[%s169_s0] sm:$0xff] }
   0x3   :  { %119 = vmatprep.subr.mxu0 %v128_v0  ;;  %v110_v5 = vld [vmem:[%s170_s2] ss:$0 sm:$0xff] }
   0x4   :  { %120 = vmatpush3.msra.mxu0 %v16_v2 }
   0x5   :  { %121 = vmatprep.subr.mxu0 %v128_v0 }
   0x6   :  { %122 = vmatpush3.msra.mxu0 %v15_v3 }
   0x7   :  { %124 = vmatmul.mubr.msk.f32.vlgmr.msra.gmra.mxu0 %vm25_vm2, %v14_v4 }
  0xc7   :  { %v99_v6 = vpop.f32.mrf.mxu0 }
  0xc8   :  { %v100_v7 = vadd.f32 %v110_v5, %v99_v6 }
  0xc9   :  { %v125_v8 = vpop.f32.mrf.mxu0 }
  0xca   :  { %v103_v9 = vmax.f32 %v100_v7, 0.0 }
  0xcc   :  { %105 = vst.msk [vmem:[%s171_s3] sm:$0xff] %vm104_vm3, %v103_v9 }

</bundles_post_ra>
